<compile_context>
chip_gen: v6e
topology: v6e:2x2x1
jax: 0.10.0
libtpu: 0.0.40
codegen_flags: <defaults>
</compile_context>

<pallas_src>
import functools

import jax
import jax.numpy as jnp
from jax.experimental import pallas as pl
from jax.experimental.pallas import tpu as pltpu


# ----------------------------------------------------------------------------
# Kernel
# ----------------------------------------------------------------------------
def _lighting_kernel(params_ref, light_ref, normals_ref, out_ref):
    # params_ref : SMEM (6,) f32 = [i*c0, i*c1, i*c2, d0, d1, d2]
    # light_ref / normals_ref / out_ref : VMEM (3, TF, 128) f32
    n = normals_ref[...]
    l = light_ref[...]
    d0 = params_ref[3]
    d1 = params_ref[4]
    d2 = params_ref[5]
    # 3-wide channel dot as VPU FMAs (deliberately NOT an MXU matmul).
    cosine = jnp.maximum(n[0] * d0 + n[1] * d1 + n[2] * d2, 0.0)  # (TF, 128)
    # three dense full-vreg stores (no stack / relayout)
    out_ref[0, :, :] = l[0] + params_ref[0] * cosine
    out_ref[1, :, :] = l[1] + params_ref[1] * cosine
    out_ref[2, :, :] = l[2] + params_ref[2] * cosine


# ----------------------------------------------------------------------------
# Helpers
# ----------------------------------------------------------------------------
_BYTES_PER_TF = 6 * 3 * 128 * 4          # 2 in + 1 out, double-buffered, f32
_MAX_LIVE_VMEM = 48 << 20                # safe on v7x (64 MiB physical VMEM)
_MAX_TF = (_MAX_LIVE_VMEM // _BYTES_PER_TF) // 8 * 8


def _choose_tf(block_faces_128, n128):
    """Pick a face tile (in units of 128 lanes): multiple of 8 or full extent."""
    tf = min(int(block_faces_128), _MAX_TF)
    if tf >= n128:
        return n128                      # full extent is always a legal block
    return max(8, (tf // 8) * 8)


def _pack_params(light_intensity, light_color, light_direction):
    inten = jnp.asarray(light_intensity, jnp.float32)
    c = [jnp.asarray(x, jnp.float32) for x in light_color]
    d = [jnp.asarray(x, jnp.float32) for x in light_direction]
    # Pre-multiply intensity*color so the kernel does one FMA per channel.
    return jnp.stack([inten * c[0], inten * c[1], inten * c[2],
                      d[0], d[1], d[2]])


def _soa_pallas_call(params, light4, normals4, *, block_faces_128,
                     donate_light):
    nb, ch, n128, lane = light4.shape
    tf = _choose_tf(block_faces_128, n128)

    spec = pl.BlockSpec((None, 3, tf, 128), lambda b, t: (b, 0, t, 0))

    live_bytes = _BYTES_PER_TF * tf
    cp_kwargs = dict(dimension_semantics=("parallel", "parallel"))
    if live_bytes > (14 << 20):
        # Only raise the scoped VMEM limit when a big user tile needs it.
        cp_kwargs["vmem_limit_bytes"] = min(live_bytes + (8 << 20), 56 << 20)

    call_kwargs = {}
    if donate_light:
        # inputs are (params, light4, normals4) -> alias light4 -> output 0
        call_kwargs["input_output_aliases"] = {1: 0}

    return pl.pallas_call(
        _lighting_kernel,
        out_shape=jax.ShapeDtypeStruct((nb, 3, n128, 128), jnp.float32),
        grid=(nb, pl.cdiv(n128, tf)),
        in_specs=[pl.BlockSpec(memory_space=pltpu.MemorySpace.SMEM),
                  spec, spec],
        out_specs=spec,
        compiler_params=pltpu.CompilerParams(**cp_kwargs),
        **call_kwargs,
    )(params, light4, normals4)


# ----------------------------------------------------------------------------
# Public entry points
# ----------------------------------------------------------------------------
@functools.partial(jax.jit, static_argnames=("block_faces_128",))
def directional_lighting_soa(light, normals, light_intensity=0.5,
                             light_color=(1.0, 1.0, 1.0),
                             light_direction=(0.0, 1.0, 0.0),
                             block_faces_128=1024):
    """SoA fast path. light / normals: [nb, 3, nf] float32, nf % 128 == 0."""
    light = jnp.asarray(light, jnp.float32)
    normals = jnp.asarray(normals, jnp.float32)
    nb, ch, nf = light.shape
    assert ch == 3 and nf % 128 == 0

    n128 = nf // 128
    light4 = light.reshape(nb, 3, n128, 128)       # free reshape, no transpose
    normals4 = normals.reshape(nb, 3, n128, 128)

    params = _pack_params(light_intensity, light_color, light_direction)
    out4 = _soa_pallas_call(params, light4, normals4,
                            block_faces_128=block_faces_128,
                            donate_light=False)
    return out4.reshape(nb, 3, nf)


@functools.partial(jax.jit, static_argnames=("block_faces_128",))
def directional_lighting(light, normals, light_intensity=0.5,
                         light_color=(1.0, 1.0, 1.0),
                         light_direction=(0.0, 1.0, 0.0),
                         block_faces_128=1024):
    """PyTorch-layout wrapper. light / normals: [nb, nf, 3].

    The transposes here are interface glue for the AoS [nb, nf, 3] convention;
    for best performance keep data SoA and call directional_lighting_soa().
    """
    light = jnp.asarray(light, jnp.float32)
    normals = jnp.asarray(normals, jnp.float32)
    nb, nf, ch = light.shape
    assert ch == 3

    inten = jnp.asarray(light_intensity, jnp.float32)
    lc = jnp.stack([jnp.asarray(x, jnp.float32) for x in light_color])
    ld = jnp.stack([jnp.asarray(x, jnp.float32) for x in light_direction])

    # Tiny-mesh fallback: pallas launch overhead dominates below ~1K faces.
    if nf < 1024:
        cosine = jnp.maximum(jnp.sum(normals * ld[None, None, :], axis=2), 0.0)
        return light + inten * (lc[None, None, :] * cosine[..., None])

    pad = (-nf) % 128
    if pad:
        # Pad on the face axis while still AoS so XLA fuses pad + transpose
        # into a single relayout pass per input.
        light = jnp.pad(light, ((0, 0), (0, pad), (0, 0)))
        normals = jnp.pad(normals, ((0, 0), (0, pad), (0, 0)))
    nf_p = nf + pad
    n128 = nf_p // 128

    light4 = jnp.transpose(light, (0, 2, 1)).reshape(nb, 3, n128, 128)
    normals4 = jnp.transpose(normals, (0, 2, 1)).reshape(nb, 3, n128, 128)

    params = _pack_params(light_intensity, light_color, light_direction)
    out4 = _soa_pallas_call(params, light4, normals4,
                            block_faces_128=block_faces_128,
                            donate_light=True)   # light4 is a temp -> free alias

    out = jnp.transpose(out4.reshape(nb, 3, nf_p), (0, 2, 1))
    return out[:, :nf, :] if pad else out


class DirectionalLighting:
    """JAX/Pallas equivalent of soft_renderer.lighting.DirectionalLighting."""
    # TODO(synk): srf.directional_lighting also accepts per-batch tensor-valued
    # light_color / light_direction; this implementation covers the module's
    # scalar/tuple constructor configuration (the nn.Module's actual state).

    def __init__(self, light_intensity=0.5, light_color=(1, 1, 1),
                 light_direction=(0, 1, 0)):
        self.light_intensity = float(light_intensity)
        self.light_color = tuple(float(c) for c in light_color)
        self.light_direction = tuple(float(d) for d in light_direction)

    def __call__(self, light, normals):
        return directional_lighting(light, normals, self.light_intensity,
                                    self.light_color, self.light_direction)

    def forward_soa(self, light_soa, normals_soa):
        return directional_lighting_soa(light_soa, normals_soa,
                                        self.light_intensity,
                                        self.light_color,
                                        self.light_direction)


# ----------------------------------------------------------------------------
# Self-test
# ----------------------------------------------------------------------------
if __name__ == "__main__":
    key = jax.random.PRNGKey(0)
    ka, kb = jax.random.split(key)

    module = DirectionalLighting(light_intensity=0.5,
                                 light_color=(1, 1, 1),
                                 light_direction=(0, 1, 0))

    def ref_fn(light, normals):
        ld = jnp.array(module.light_direction, jnp.float32)
        lc = jnp.array(module.light_color, jnp.float32)
        cosine = jnp.maximum(jnp.sum(normals * ld[None, None, :], axis=2), 0.0)
        return light + module.light_intensity * (lc[None, None, :]
                                                 * cosine[..., None])

    # --- main test: Pallas kernel path (nf multiple of 128) -----------------
    nb, nf = 2, 2048
    light = jax.random.uniform(ka, (nb, nf, 3), dtype=jnp.float32)
    normals = jax.random.normal(kb, (nb, nf, 3), dtype=jnp.float32)
    normals = normals / jnp.linalg.norm(normals, axis=-1, keepdims=True)

    out = module(light, normals)
    jax.block_until_ready(out)
    assert out.shape == (nb, nf, 3) and out.dtype == jnp.float32
    assert jnp.allclose(out, ref_fn(light, normals), atol=1e-5, rtol=1e-5)

    # --- SoA zero-copy fast path (kernel, no wrapper transposes) ------------
    out_soa = module.forward_soa(jnp.transpose(light, (0, 2, 1)),
                                 jnp.transpose(normals, (0, 2, 1)))
    jax.block_until_ready(out_soa)
    assert jnp.allclose(jnp.transpose(out_soa, (0, 2, 1)),
                        ref_fn(light, normals), atol=1e-5, rtol=1e-5)

    # --- ragged face count (kernel path + fused pad / slice) ----------------
    nf2 = 1200
    l2, n2 = light[:, :nf2, :], normals[:, :nf2, :]
    out2 = module(l2, n2)
    jax.block_until_ready(out2)
    assert jnp.allclose(out2, ref_fn(l2, n2), atol=1e-5, rtol=1e-5)

    # --- tiny mesh: fused-jnp fallback (no pallas launch) -------------------
    nf3 = 200
    l3, n3 = light[:, :nf3, :], normals[:, :nf3, :]
    out3 = module(l3, n3)
    jax.block_until_ready(out3)
    assert jnp.allclose(out3, ref_fn(l3, n3), atol=1e-5, rtol=1e-5)

    print("KERNEL_OK")
</pallas_src>

<mosaic_0001>
module attributes {stable_mosaic.version = 11 : i64} {
  func.func @_lighting_kernel(%arg0: i32, %arg1: i32, %arg2: memref<6xf32, #tpu.memory_space<smem>>, %arg3: memref<1x3x16x128xf32, #tpu.memory_space<vmem>>, %arg4: memref<1x3x16x128xf32, #tpu.memory_space<vmem>>, %arg5: memref<1x3x16x128xf32, #tpu.memory_space<vmem>>) attributes {dimension_semantics = [#tpu.dimension_semantics<parallel>, #tpu.dimension_semantics<parallel>], iteration_bounds = array<i64: 2, 1>, scalar_prefetch = 0 : i64, scratch_operands = 0 : i64, tpu.core_type = #tpu.core_type<tc>, window_params = [{transform_indices = @transform_0, window_bounds = array<i64: 6>}, {transform_indices = @transform_1, window_bounds = array<i64: 1, 3, 16, 128>}, {transform_indices = @transform_2, window_bounds = array<i64: 1, 3, 16, 128>}, {transform_indices = @transform_3, window_bounds = array<i64: 1, 3, 16, 128>}]} {
    %c0 = arith.constant 0 : index
    %c0_0 = arith.constant 0 : index
    %c0_1 = arith.constant 0 : index
    %c0_2 = arith.constant 0 : index
    %0 = vector.load %arg4[%c0, %c0_0, %c0_1, %c0_2] : memref<1x3x16x128xf32, #tpu.memory_space<vmem>>, vector<1x3x16x128xf32>
    %1 = vector.shape_cast %0 : vector<1x3x16x128xf32> to vector<3x16x128xf32>
    %c0_3 = arith.constant 0 : index
    %c0_4 = arith.constant 0 : index
    %c0_5 = arith.constant 0 : index
    %c0_6 = arith.constant 0 : index
    %2 = vector.load %arg3[%c0_3, %c0_4, %c0_5, %c0_6] : memref<1x3x16x128xf32, #tpu.memory_space<vmem>>, vector<1x3x16x128xf32>
    %3 = vector.shape_cast %2 : vector<1x3x16x128xf32> to vector<3x16x128xf32>
    %c3 = arith.constant 3 : index
    %4 = memref.load %arg2[%c3] : memref<6xf32, #tpu.memory_space<smem>>
    %c4 = arith.constant 4 : index
    %5 = memref.load %arg2[%c4] : memref<6xf32, #tpu.memory_space<smem>>
    %c5 = arith.constant 5 : index
    %6 = memref.load %arg2[%c5] : memref<6xf32, #tpu.memory_space<smem>>
    %7 = vector.extract_strided_slice %1 {offsets = [0, 0, 0], sizes = [1, 16, 128], strides = [1, 1, 1]} : vector<3x16x128xf32> to vector<1x16x128xf32>
    %8 = vector.shape_cast %7 : vector<1x16x128xf32> to vector<16x128xf32>
    %9 = vector.broadcast %4 : f32 to vector<16x128xf32>
    %10 = arith.mulf %8, %9 : vector<16x128xf32>
    %11 = vector.extract_strided_slice %1 {offsets = [1, 0, 0], sizes = [1, 16, 128], strides = [1, 1, 1]} : vector<3x16x128xf32> to vector<1x16x128xf32>
    %12 = vector.shape_cast %11 : vector<1x16x128xf32> to vector<16x128xf32>
    %13 = vector.broadcast %5 : f32 to vector<16x128xf32>
    %14 = arith.mulf %12, %13 : vector<16x128xf32>
    %15 = arith.addf %10, %14 : vector<16x128xf32>
    %16 = vector.extract_strided_slice %1 {offsets = [2, 0, 0], sizes = [1, 16, 128], strides = [1, 1, 1]} : vector<3x16x128xf32> to vector<1x16x128xf32>
    %17 = vector.shape_cast %16 : vector<1x16x128xf32> to vector<16x128xf32>
    %18 = vector.broadcast %6 : f32 to vector<16x128xf32>
    %19 = arith.mulf %17, %18 : vector<16x128xf32>
    %20 = arith.addf %15, %19 : vector<16x128xf32>
    %cst = arith.constant 0.000000e+00 : f32
    %21 = vector.broadcast %cst : f32 to vector<16x128xf32>
    %22 = arith.maximumf %20, %21 : vector<16x128xf32>
    %23 = vector.extract_strided_slice %3 {offsets = [0, 0, 0], sizes = [1, 16, 128], strides = [1, 1, 1]} : vector<3x16x128xf32> to vector<1x16x128xf32>
    %24 = vector.shape_cast %23 : vector<1x16x128xf32> to vector<16x128xf32>
    %c0_7 = arith.constant 0 : index
    %25 = memref.load %arg2[%c0_7] : memref<6xf32, #tpu.memory_space<smem>>
    %26 = vector.broadcast %25 : f32 to vector<16x128xf32>
    %27 = arith.mulf %26, %22 : vector<16x128xf32>
    %28 = arith.addf %24, %27 : vector<16x128xf32>
    %c0_8 = arith.constant 0 : index
    %c0_9 = arith.constant 0 : index
    %c0_10 = arith.constant 0 : index
    %c0_11 = arith.constant 0 : index
    %29 = vector.load %arg5[%c0_8, %c0_9, %c0_10, %c0_11] : memref<1x3x16x128xf32, #tpu.memory_space<vmem>>, vector<1x1x16x128xf32>
    %30 = vector.shape_cast %29 : vector<1x1x16x128xf32> to vector<16x128xf32>
    %31 = vector.shape_cast %28 : vector<16x128xf32> to vector<1x1x16x128xf32>
    tpu.vector_store %arg5[%c0_8, %c0_9, %c0_10, %c0_11], %31 {strides = array<i32>} : memref<1x3x16x128xf32, #tpu.memory_space<vmem>>, vector<1x1x16x128xf32>,
    %32 = vector.extract_strided_slice %3 {offsets = [1, 0, 0], sizes = [1, 16, 128], strides = [1, 1, 1]} : vector<3x16x128xf32> to vector<1x16x128xf32>
    %33 = vector.shape_cast %32 : vector<1x16x128xf32> to vector<16x128xf32>
    %c1 = arith.constant 1 : index
    %34 = memref.load %arg2[%c1] : memref<6xf32, #tpu.memory_space<smem>>
    %35 = vector.broadcast %34 : f32 to vector<16x128xf32>
    %36 = arith.mulf %35, %22 : vector<16x128xf32>
    %37 = arith.addf %33, %36 : vector<16x128xf32>
    %c0_12 = arith.constant 0 : index
    %c1_13 = arith.constant 1 : index
    %c0_14 = arith.constant 0 : index
    %c0_15 = arith.constant 0 : index
    %38 = vector.load %arg5[%c0_12, %c1_13, %c0_14, %c0_15] : memref<1x3x16x128xf32, #tpu.memory_space<vmem>>, vector<1x1x16x128xf32>
    %39 = vector.shape_cast %38 : vector<1x1x16x128xf32> to vector<16x128xf32>
    %40 = vector.shape_cast %37 : vector<16x128xf32> to vector<1x1x16x128xf32>
    tpu.vector_store %arg5[%c0_12, %c1_13, %c0_14, %c0_15], %40 {strides = array<i32>} : memref<1x3x16x128xf32, #tpu.memory_space<vmem>>, vector<1x1x16x128xf32>,
    %41 = vector.extract_strided_slice %3 {offsets = [2, 0, 0], sizes = [1, 16, 128], strides = [1, 1, 1]} : vector<3x16x128xf32> to vector<1x16x128xf32>
    %42 = vector.shape_cast %41 : vector<1x16x128xf32> to vector<16x128xf32>
    %c2 = arith.constant 2 : index
    %43 = memref.load %arg2[%c2] : memref<6xf32, #tpu.memory_space<smem>>
    %44 = vector.broadcast %43 : f32 to vector<16x128xf32>
    %45 = arith.mulf %44, %22 : vector<16x128xf32>
    %46 = arith.addf %42, %45 : vector<16x128xf32>
    %c0_16 = arith.constant 0 : index
    %c2_17 = arith.constant 2 : index
    %c0_18 = arith.constant 0 : index
    %c0_19 = arith.constant 0 : index
    %47 = vector.load %arg5[%c0_16, %c2_17, %c0_18, %c0_19] : memref<1x3x16x128xf32, #tpu.memory_space<vmem>>, vector<1x1x16x128xf32>
    %48 = vector.shape_cast %47 : vector<1x1x16x128xf32> to vector<16x128xf32>
    %49 = vector.shape_cast %46 : vector<16x128xf32> to vector<1x1x16x128xf32>
    tpu.vector_store %arg5[%c0_16, %c2_17, %c0_18, %c0_19], %49 {strides = array<i32>} : memref<1x3x16x128xf32, #tpu.memory_space<vmem>>, vector<1x1x16x128xf32>,
    return
  }
  func.func @transform_0(%arg0: i32, %arg1: i32) -> i32 {
    %c0_i32 = arith.constant 0 : i32
    %c0_i32_0 = arith.constant 0 : i32
    return %c0_i32 : i32
  }
  func.func @transform_1(%arg0: i32, %arg1: i32) -> (i32, i32, i32, i32) {
    %c0_i32 = arith.constant 0 : i32
    %c0_i32_0 = arith.constant 0 : i32
    %c0_i32_1 = arith.constant 0 : i32
    return %arg0, %c0_i32, %arg1, %c0_i32_0 : i32, i32, i32, i32
  }
  func.func @transform_2(%arg0: i32, %arg1: i32) -> (i32, i32, i32, i32) {
    %c0_i32 = arith.constant 0 : i32
    %c0_i32_0 = arith.constant 0 : i32
    %c0_i32_1 = arith.constant 0 : i32
    return %arg0, %c0_i32, %arg1, %c0_i32_0 : i32, i32, i32, i32
  }
  func.func @transform_3(%arg0: i32, %arg1: i32) -> (i32, i32, i32, i32) {
    %c0_i32 = arith.constant 0 : i32
    %c0_i32_0 = arith.constant 0 : i32
    %c0_i32_1 = arith.constant 0 : i32
    return %arg0, %c0_i32, %arg1, %c0_i32_0 : i32, i32, i32, i32
  }
}

</mosaic_0001>

<bundles_post_ra>
// kernel: directional_lighting.1
= control target key start
LH: loop header
LB: loop body
LE: loop exit
PB: predicated region body
PF: predicated region fallthrough
CT: control target
= control target key end

     0   :  { %8 = vsyncpa [#allocation3], 0  ;;  %s554_s12 = smov 0   ;;  %s556_s13 = smov 0   ;;  %s630_s0 = inlined_call_operand.vmem [shape: f32[6], index: 0, kind: input, shape index: {}]   ;;  %s631_s1 = inlined_call_operand.vmem [shape: f32[2,3,16,128], index: 1, kind: input, shape index: {}, may-alias: {1,3}]   ;;  %s632_s2 = inlined_call_operand.vmem [shape: f32[2,3,16,128], index: 2, kind: input, shape index: {}]   ;;  %s633_s3 = inlined_call_operand.vmem [shape: f32[2,3,16,128], index: 3, kind: output, shape index: {}, may-alias: {1,3}]  }
   0x1   :  { %s558_s14 = smov 0  }
   0x2 LB: > { %s433_s15 = sadd.s32 4294967295, %s531_s14   ;;  %s26_s16 = sadd.s32 1, %s527_s13  ;;  %s531_s14 = sphi %s558_s14, %s14_s14   ;;  %s527_s13 = sphi %s556_s13, %s637_s13   ;;  %s523_s12 = sphi %s554_s12, %s636_s12  }
   0x3   : > { %p28_p0 = scmp.ge.s32.totalorder %s26_s16, 2  ;;  %p435_p1 = scmp.ge.s32.totalorder %s531_s14, 1 }
   0x4   : > { %p136_p2 = scmp.lt.s32.totalorder %s531_s14, 3  ;;  %p579_p4 = scmp.eq.s32.totalorder %s433_s15, 0 }
   0x5   : > { %s639_s16 = smov (%p28_p0, %s26_s16), 0  ;;  %s149_s21 = sshll.u32 %s630_s0, 4  ;;  %s150_s21 = int_to_ptr.vmem [resolvable:$true] %s149_s21 }
   0x6   : > { %p575_p3 = pnand %p435_p1, %p136_p2  ;;  %s490_s22 = scalar_lea.vmem %s150_s21, 16 }
   0x7   : > { %p491_p7 = scmp.ne.s32.totalorder %s150_s21, %s490_s22  ;;  %p498_p11 = scmp.lt.s32.totalorder %s150_s21, %s150_s21 }
   0x8   : > { %p459_p5 = pneg %p575_p3  ;;  %p499_p12 = scmp.lt.s32.totalorder %s490_s22, %s490_s22 }
   0xa   : > { %p460_p6 = pnand %p579_p4, %p459_p5  ;;  %p500_p13 = por %p499_p12, %p498_p11 }
   0xc   : > { %p492_p8 = pneg %p460_p6 }
   0xe   : > { %p493_p9 = pnand %p492_p8, %p491_p7 }
  0x10   : > { %p494_p10 = pneg %p493_p9 }
  0x12   : > { %p501_p0 = pnand %p500_p13, %p494_p10 }
  0x14   : > { %504 = shalt.err (!%p501_p0)
}
  0x15   : > { %s533_s23 = smov [#allocation2]   ;;  %188 = sbr.rel (%p575_p3) target bundleno = 52 (0x34), region = 32 }
  0x16   : > { %462 = dma.vmem_to_smem (!%p460_p6), %s150_s21, 16, %s533_s23, [#allocation3]  }
  0x1a   : > { %518 = dma.done.wait (%p579_p4), [#allocation3], 16  }
  0x1b   : > { %520 = vsyncadd (%p579_p4), [#allocation3], 4294967280 }
  0x1c   : > { %194 = sfence }
  0x1d   : > { %p231_p1 = scmp.lt.s32.totalorder %s523_s12, 1  ;;  %s443_s24 = sld [smem:[#allocation2 + $0x3]] }
  0x1e   : > { %s444_s25 = sld [smem:[#allocation2 + $0x4]] }
  0x1f   : > { %s641_s12 = smov (!%p231_p1, %s523_s12), 1  ;;  %s445_s26 = sld [smem:[#allocation2 + $0x5]] }
  0x20   : > { %s598_s27 = smul.u32 48, %s641_s12  ;;  %s600_s28 = sld [smem:[#allocation2]] }
  0x21   : > { %s602_s29 = sld [smem:[#allocation2 + $0x1]] }
  0x22   : > { %s248_s5 = scalar_lea.vmem %s632_s2, %s598_s27  ;;  %s608_s6 = sld [smem:[#allocation2 + $0x2]] }
  0x23   : > { %v275_v0 = vstv %s443_s24  ;;  %v260_v1 = vld [vmem:[%s248_s5] sm:$0xff]  ;;  %v261_v2 = vld [vmem:[%s248_s5 + $0x8] sm:$0xff]  ;;  %v262_v3 = vld [vmem:[%s248_s5 + $0x10] sm:$0xff]  ;;  %s238_s9 = scalar_lea.vmem %s631_s1, %s598_s27  ;;  %s258_s12 = scalar_lea.vmem %s633_s3, %s598_s27 }
  0x24   : > { %v278_v4 = vstv %s444_s25  ;;  %v263_v5 = vld [vmem:[%s248_s5 + $0x18] sm:$0xff]  ;;  %v264_v6 = vld [vmem:[%s248_s5 + $0x20] sm:$0xff]  ;;  %v265_v7 = vld [vmem:[%s248_s5 + $0x28] sm:$0xff]  ;;  %v276_v8 = vmul.f32 %v275_v0, %v260_v1  ;;  %v277_v9 = vmul.f32 %v275_v0, %v261_v2 }
  0x25   : > { %v279_v10 = vmul.f32 %v278_v4, %v262_v3  ;;  %v280_v11 = vmul.f32 %v278_v4, %v263_v5  ;;  %v283_v12 = vstv %s445_s26  ;;  %v266_v23 = vld [vmem:[%s238_s9] sm:$0xff]  ;;  %v268_v24 = vld [vmem:[%s238_s9 + $0x10] sm:$0xff]  ;;  %v267_v27 = vld [vmem:[%s238_s9 + $0x8] sm:$0xff] }
  0x26   : > { %v284_v14 = vmul.f32 %v283_v12, %v264_v6  ;;  %v285_v15 = vmul.f32 %v283_v12, %v265_v7  ;;  %v291_v19 = vstv %s600_s28  ;;  %v270_v25 = vld [vmem:[%s238_s9 + $0x20] sm:$0xff]  ;;  %v269_v28 = vld [vmem:[%s238_s9 + $0x18] sm:$0xff]  ;;  %v271_v29 = vld [vmem:[%s238_s9 + $0x28] sm:$0xff] }
  0x27   : > { %v281_v13 = vadd.f32 %v279_v10, %v276_v8  ;;  %v282_v16 = vadd.f32 %v280_v11, %v277_v9  ;;  %v299_v20 = vstv %s602_s29 }
  0x28   : > { %v308_v21 = vstv %s608_s6 }
  0x29   : > { %v286_v17 = vadd.f32 %v284_v14, %v281_v13  ;;  %v287_v18 = vadd.f32 %v285_v15, %v282_v16 }
  0x2b   : > { %v288_v22 = vmax.f32 %v286_v17, 0.0  ;;  %v289_v26 = vmax.f32 %v287_v18, 0.0 }
  0x2d   : > { %v292_v30 = vmul.f32 %v291_v19, %v288_v22  ;;  %v300_v31 = vmul.f32 %v299_v20, %v288_v22  ;;  %v309_v32 = vmul.f32 %v308_v21, %v288_v22  ;;  %v293_v33 = vmul.f32 %v291_v19, %v289_v26 }
  0x2e   : > { %v301_v34 = vmul.f32 %v299_v20, %v289_v26  ;;  %v310_v35 = vmul.f32 %v308_v21, %v289_v26 }
  0x2f   : > { %v294_v36 = vadd.f32 %v292_v30, %v266_v23  ;;  %v302_v37 = vadd.f32 %v300_v31, %v268_v24  ;;  %v311_v38 = vadd.f32 %v309_v32, %v270_v25  ;;  %v295_v39 = vadd.f32 %v293_v33, %v267_v27 }
  0x30   : > { %v303_v40 = vadd.f32 %v301_v34, %v269_v28  ;;  %v312_v41 = vadd.f32 %v310_v35, %v271_v29 }
  0x31   : > { %296 = vst [vmem:[%s258_s12] sm:$0xff] %v294_v36  ;;  %447 = vst [vmem:[%s258_s12 + $0x10] sm:$0xff] %v302_v37 }
  0x32   : > { %450 = vst [vmem:[%s258_s12 + $0x20] sm:$0xff] %v311_v38  ;;  %297 = vst [vmem:[%s258_s12 + $0x8] sm:$0xff] %v295_v39 }
  0x33   : > { %448 = vst [vmem:[%s258_s12 + $0x18] sm:$0xff] %v303_v40  ;;  %451 = vst [vmem:[%s258_s12 + $0x28] sm:$0xff] %v312_v41 }
  0x34 PF: > { %s14_s14 = sadd.s32 1, %s531_s14   ;;  %s636_s12 = smov %s527_s13 }
  0x35   : > { %p11_p2 = scmp.ge.s32.totalorder %s14_s14, 4   ;;  %s637_s13 = smov %s639_s16 }
  0x37   :  { %13 = sbr.rel (!%p11_p2) target bundleno = 2 (0x2), region = 72 }
  0x3c   :  { %346 = vsyncpa [#allocation3], 1 }
  0x3d   :  { %348 = vsyncpa [#allocation3 + $0x1], 1 }

</bundles_post_ra>
